<compile_context>
chip_gen: v5e
topology: v5e:2x2
jax: 0.10.0
libtpu: 0.0.40
codegen_flags: <defaults>
</compile_context>

<pallas_src>
import math

import jax
import jax.numpy as jnp
from jax.experimental import pallas as pl
from jax.experimental.pallas import tpu as pltpu


def _round_up(a, b):
    return (a + b - 1) // b * b


# ------------------------------ fused kernels ------------------------------ #

def _make_kernel(g, dx, e_pad, expand_x):
    """Build the fused kernel. All sizes are static (trace-time) Python ints."""
    if expand_x:
        def kernel(x_ref, pe_ref, wx_ref, wpe_ref, b_ref, o_ref):
            acc = jnp.dot(x_ref[...], wx_ref[...],
                          preferred_element_type=jnp.float32)
            acc = acc + jnp.dot(pe_ref[...], wpe_ref[...],
                                preferred_element_type=jnp.float32)
            o_ref[...] = (acc + b_ref[...]).astype(o_ref.dtype)
    else:
        def kernel(x_ref, pe_ref, wpe_ref, b_ref, o_ref):
            acc = jnp.dot(pe_ref[...], wpe_ref[...],
                          preferred_element_type=jnp.float32) + b_ref[...]
            o_ref[...] = acc.astype(o_ref.dtype)
            # x passes through unchanged: copy its columns straight into the
            # output tile instead of an identity matmul through the MXU.
            for j in range(g):
                o_ref[:, j * e_pad:j * e_pad + dx] = (
                    x_ref[:, j * dx:(j + 1) * dx].astype(o_ref.dtype))
    return kernel


# -------------------------------- wrapper ---------------------------------- #

def _fused_forward(x, pe, wx_big, wpe_big, b_big, *, g, e, e_pad, expand_x,
                   tile_n=None):
    n, dx = x.shape
    s = pe.shape[1]
    out_dtype = x.dtype

    # Pad only to the packing / sublane alignment (8*g rows); ragged tiles are
    # handled by a cdiv grid with masked tail stores (block-diagonal weights
    # keep garbage tail rows isolated in their own output rows).
    row_align = 8 * g
    n_pad = _round_up(n, row_align)
    if n_pad != n:
        x = jnp.pad(x, ((0, n_pad - n), (0, 0)))
        pe = jnp.pad(pe, ((0, n_pad - n), (0, 0)))

    rows = n_pad // g
    xv = x.reshape(rows, g * dx)          # free HBM metadata reshapes
    pev = pe.reshape(rows, g * s)

    in_item = x.dtype.itemsize
    out_item = jnp.dtype(out_dtype).itemsize
    per_row = (g * dx + g * s) * in_item + g * e_pad * out_item
    w_bytes = wpe_big.size * wpe_big.dtype.itemsize + b_big.size * b_big.dtype.itemsize
    if wx_big is not None:
        w_bytes += wx_big.size * wx_big.dtype.itemsize

    # Row tile from a VMEM byte budget (double-buffered tiles + weights):
    # amortizes the ~0.35us per-grid-step overhead instead of a tiny fixed tile.
    pipe_budget = 44 << 20                             # fits v7x's 64 MiB VMEM
    avail = max(pipe_budget - 2 * w_bytes, 4 << 20)
    tr = max(8, avail // (2 * per_row))
    if tile_n is not None:
        tr = min(tr, max(1, tile_n // g))
    # Keep >= ~4 grid steps on big problems so the "parallel" row axis can be
    # sharded across v7x's two TensorCores.
    split_tr = _round_up(pl.cdiv(rows, 4), 8)
    if split_tr >= 256:
        tr = min(tr, split_tr)
    tr = max(8, min((tr // 8) * 8, rows))
    grid = pl.cdiv(rows, tr)

    vmem_needed = 2 * tr * per_row + 2 * w_bytes + (2 << 20)
    vmem_limit = int(min(max(vmem_needed, 32 << 20), 56 << 20))

    kernel = _make_kernel(g, dx, e_pad, expand_x)

    def row_spec(cols):
        return pl.BlockSpec((tr, cols), lambda i: (i, 0))

    def const_spec(r, c):
        return pl.BlockSpec((r, c), lambda i: (0, 0))     # resident operand

    if expand_x:
        in_specs = [row_spec(g * dx), row_spec(g * s),
                    const_spec(g * dx, g * e_pad),
                    const_spec(g * s, g * e_pad),
                    const_spec(1, g * e_pad)]
        operands = (xv, pev, wx_big, wpe_big, b_big)
    else:
        in_specs = [row_spec(g * dx), row_spec(g * s),
                    const_spec(g * s, g * e_pad),
                    const_spec(1, g * e_pad)]
        operands = (xv, pev, wpe_big, b_big)

    out = pl.pallas_call(
        kernel,
        out_shape=jax.ShapeDtypeStruct((rows, g * e_pad), out_dtype),
        grid=(grid,),
        in_specs=in_specs,
        out_specs=pl.BlockSpec((tr, g * e_pad), lambda i: (i, 0)),
        compiler_params=pltpu.CompilerParams(
            dimension_semantics=("parallel",),
            vmem_limit_bytes=vmem_limit),
    )(*operands)

    out = out.reshape(n_pad, e_pad)
    if n_pad != n:
        out = out[:n]
    if e_pad != e:
        out = out[:, :e]
    return out


# ---------------------- module-equivalent forward --------------------------- #

class RandomWalkEncoderPallas:
    """JAX/Pallas port of RandomWalkEncoder (forward pass, eval-mode BN)."""

    def __init__(self, rw_steps, pe_embed_dim, x_dim, embed_dim,
                 attr_name="rw_pe", expand_x=False, eps=1e-5, *, key):
        self.attr_name = attr_name
        self.expand_x = expand_x
        self.rw_steps = rw_steps
        self.pe_embed_dim = pe_embed_dim
        self.eps = eps

        keys = jax.random.split(key, 4)

        def linear_init(kw, kb, fan_in, fan_out):
            # matches nn.Linear default init: U(-1/sqrt(fan_in), 1/sqrt(fan_in))
            bound = 1.0 / math.sqrt(fan_in)
            w = jax.random.uniform(kw, (fan_in, fan_out), jnp.float32, -bound, bound)
            b = jax.random.uniform(kb, (fan_out,), jnp.float32, -bound, bound)
            return w, b

        # nn.BatchNorm1d(rw_steps): affine params + running stats (eval mode).
        self.bn_gamma = jnp.ones((rw_steps,), jnp.float32)
        self.bn_beta = jnp.zeros((rw_steps,), jnp.float32)
        self.bn_mean = jnp.zeros((rw_steps,), jnp.float32)
        self.bn_var = jnp.ones((rw_steps,), jnp.float32)

        # nn.Linear(rw_steps, pe_embed_dim)
        self.w_pe, self.b_pe = linear_init(keys[0], keys[1], rw_steps, pe_embed_dim)

        if expand_x and embed_dim - pe_embed_dim > 0:
            self.wx, self.bx = linear_init(keys[2], keys[3], x_dim,
                                           embed_dim - pe_embed_dim)
        elif expand_x:
            raise ValueError(
                "embed_dim - pe_embed_dim should be greater than 0 if expand_x is True")

        self._pack_cache = {}

    def clear_packed_cache(self):
        """Call after mutating weights / BN stats so packed params are rebuilt."""
        self._pack_cache = {}

    def _packed_params(self, dx_in, dtype):
        cache_key = (int(dx_in), jnp.dtype(dtype).name)
        if cache_key in self._pack_cache:
            return self._pack_cache[cache_key]

        s = self.rw_steps
        f32 = jnp.float32

        # Fold eval-mode BatchNorm1d into the PE linear.
        # TODO(synk): training-mode BatchNorm1d (batch statistics + running-stat
        # updates) is not implemented; this kernel covers inference forward only.
        inv_std = 1.0 / jnp.sqrt(self.bn_var + self.eps)
        scale = self.bn_gamma * inv_std
        shift = self.bn_beta - self.bn_mean * scale
        w_pe_f = scale[:, None] * self.w_pe
        b_pe_f = self.b_pe + shift @ self.w_pe

        if self.expand_x:
            dxo = self.wx.shape[1]
            bx_eff = self.bx
        else:
            dxo = int(dx_in)
            bx_eff = jnp.zeros((dxo,), f32)

        e = dxo + self.pe_embed_dim

        # Row-packing factor g so the packed output width is a multiple of 128
        # (unmasked lane-dense stores).  Budget-checked fallback: no packing,
        # pad the output columns to 128 instead (still lane-dense).
        g = 128 // math.gcd(e, 128)
        kron_bytes = g * g * e * ((dx_in if self.expand_x else 0) + s) * 4
        if g * e > 1024 or kron_bytes > (8 << 20):
            g = 1
            e_pad = _round_up(e, 128)
        else:
            e_pad = e

        # Zero-pad weights into the full output column space so the concat is a
        # sum of matmuls (no concatenate op at all).
        wpe_full = jnp.concatenate(
            [jnp.zeros((s, dxo), f32), w_pe_f.astype(f32),
             jnp.zeros((s, e_pad - e), f32)], axis=1)
        b_full = jnp.concatenate(
            [bx_eff.astype(f32), b_pe_f.astype(f32), jnp.zeros((e_pad - e,), f32)])

        eye_g = jnp.eye(g, dtype=f32)
        wpe_big = jnp.kron(eye_g, wpe_full).astype(dtype)
        b_big = jnp.tile(b_full.reshape(1, e_pad), (1, g)).astype(f32)
        if self.expand_x:
            wx_full = jnp.concatenate(
                [self.wx.astype(f32), jnp.zeros((self.wx.shape[0], e_pad - dxo), f32)],
                axis=1)
            wx_big = jnp.kron(eye_g, wx_full).astype(dtype)
        else:
            wx_big = None

        # NOTE: for a pure HBM-roofline on v5e one can pre-cast wx_big/wpe_big
        # (and the kernel's x/pe tiles) to bf16; kept fp32 here for accuracy.
        packed = dict(g=g, e=e, e_pad=e_pad,
                      wx_big=wx_big, wpe_big=wpe_big, b_big=b_big)
        self._pack_cache[cache_key] = packed
        return packed

    def __call__(self, batch, *, tile_n=None):
        x = batch["x"]
        pe = batch[self.attr_name]
        p = self._packed_params(x.shape[1], x.dtype)
        out = _fused_forward(
            x, pe, p["wx_big"], p["wpe_big"], p["b_big"],
            g=p["g"], e=p["e"], e_pad=p["e_pad"],
            expand_x=self.expand_x, tile_n=tile_n)
        new_batch = dict(batch)
        new_batch["x"] = out
        return new_batch


# -------------------------------- reference --------------------------------- #

def _reference_forward(enc, batch):
    x = batch["x"]
    if enc.expand_x:
        x = jnp.dot(x, enc.wx, precision=jax.lax.Precision.HIGHEST) + enc.bx
    pe = batch[enc.attr_name]
    pe = (pe - enc.bn_mean) / jnp.sqrt(enc.bn_var + enc.eps) * enc.bn_gamma + enc.bn_beta
    pe = jnp.dot(pe, enc.w_pe, precision=jax.lax.Precision.HIGHEST) + enc.b_pe
    return jnp.concatenate([x, pe], axis=-1)


# ---------------------------------- main ------------------------------------ #

if __name__ == "__main__":
    key = jax.random.PRNGKey(0)
    ks = jax.random.split(key, 8)

    N = 100           # number of nodes (deliberately not tile-aligned)
    RW_STEPS = 8      # random-walk steps (BN / PE input width)
    PE_DIM = 16       # pe_embed_dim
    X_DIM = 12        # x_dim
    EMBED_DIM = 32    # embed_dim -> linear_x maps x_dim -> 16

    batch = {
        "x": jax.random.normal(ks[0], (N, X_DIM), jnp.float32),
        "rw_pe": jax.random.normal(ks[1], (N, RW_STEPS), jnp.float32),
    }

    def make_enc(expand_x, kp):
        enc = RandomWalkEncoderPallas(
            rw_steps=RW_STEPS, pe_embed_dim=PE_DIM, x_dim=X_DIM,
            embed_dim=EMBED_DIM, attr_name="rw_pe", expand_x=expand_x, key=kp)
        # nontrivial BN statistics / affine so the BN fold is actually exercised
        enc.bn_mean = jax.random.normal(ks[2], (RW_STEPS,), jnp.float32)
        enc.bn_var = jax.random.uniform(ks[3], (RW_STEPS,), jnp.float32, 0.5, 2.0)
        enc.bn_gamma = jax.random.uniform(ks[4], (RW_STEPS,), jnp.float32, 0.5, 1.5)
        enc.bn_beta = 0.1 * jax.random.normal(ks[5], (RW_STEPS,), jnp.float32)
        enc.clear_packed_cache()
        return enc

    # expand_x=True : fused linear_x + BN-folded PE linear + concat
    enc_t = make_enc(True, ks[6])
    out_t = jax.block_until_ready(enc_t(batch)["x"])
    ref_t = _reference_forward(enc_t, batch)
    assert out_t.shape == (N, EMBED_DIM), out_t.shape
    err_t = float(jnp.max(jnp.abs(out_t - ref_t)))
    assert jnp.allclose(out_t, ref_t, atol=2e-4, rtol=2e-4), err_t

    # expand_x=False : x pass-through (no identity matmul) + PE linear + concat
    enc_f = make_enc(False, ks[7])
    out_f = jax.block_until_ready(enc_f(batch)["x"])
    ref_f = _reference_forward(enc_f, batch)
    assert out_f.shape == (N, X_DIM + PE_DIM), out_f.shape
    err_f = float(jnp.max(jnp.abs(out_f - ref_f)))
    assert jnp.allclose(out_f, ref_f, atol=2e-4, rtol=2e-4), err_f

    print("KERNEL_OK")
</pallas_src>

<mosaic_0001>
module attributes {stable_mosaic.version = 11 : i64} {
  func.func @kernel(%arg0: i32, %arg1: memref<32x48xf32, #tpu.memory_space<vmem>>, %arg2: memref<32x32xf32, #tpu.memory_space<vmem>>, %arg3: memref<48x128xf32, #tpu.memory_space<vmem>>, %arg4: memref<32x128xf32, #tpu.memory_space<vmem>>, %arg5: memref<1x128xf32, #tpu.memory_space<vmem>>, %arg6: memref<32x128xf32, #tpu.memory_space<vmem>>) attributes {dimension_semantics = [#tpu.dimension_semantics<parallel>], iteration_bounds = array<i64: 1>, scalar_prefetch = 0 : i64, scratch_operands = 0 : i64, tpu.core_type = #tpu.core_type<tc>, window_params = [{transform_indices = @transform_0, window_bounds = array<i64: 32, 48>}, {transform_indices = @transform_1, window_bounds = array<i64: 32, 32>}, {pipeline_mode = #tpu.pipeline_mode<synchronous>, transform_indices = @transform_2, window_bounds = array<i64: 48, 128>}, {pipeline_mode = #tpu.pipeline_mode<synchronous>, transform_indices = @transform_3, window_bounds = array<i64: 32, 128>}, {pipeline_mode = #tpu.pipeline_mode<synchronous>, transform_indices = @transform_4, window_bounds = array<i64: 1, 128>}, {transform_indices = @transform_5, window_bounds = array<i64: 32, 128>}]} {
    %c0 = arith.constant 0 : index
    %c0_0 = arith.constant 0 : index
    %0 = vector.load %arg1[%c0, %c0_0] : memref<32x48xf32, #tpu.memory_space<vmem>>, vector<32x48xf32>
    %c0_1 = arith.constant 0 : index
    %c0_2 = arith.constant 0 : index
    %1 = vector.load %arg3[%c0_1, %c0_2] : memref<48x128xf32, #tpu.memory_space<vmem>>, vector<48x128xf32>
    %cst = arith.constant dense<0.000000e+00> : vector<32x128xf32>
    %2 = tpu.matmul %0, %1, %cst {dimension_numbers = #tpu.dot_dimension_numbers<[1], [0], [0], [1], [0, 0, 1, 1], [], []>} : vector<32x48xf32>, vector<48x128xf32>, vector<32x128xf32> -> vector<32x128xf32>
    %c0_3 = arith.constant 0 : index
    %c0_4 = arith.constant 0 : index
    %3 = vector.load %arg2[%c0_3, %c0_4] : memref<32x32xf32, #tpu.memory_space<vmem>>, vector<32x32xf32>
    %c0_5 = arith.constant 0 : index
    %c0_6 = arith.constant 0 : index
    %4 = vector.load %arg4[%c0_5, %c0_6] : memref<32x128xf32, #tpu.memory_space<vmem>>, vector<32x128xf32>
    %cst_7 = arith.constant dense<0.000000e+00> : vector<32x128xf32>
    %5 = tpu.matmul %3, %4, %cst_7 {dimension_numbers = #tpu.dot_dimension_numbers<[1], [0], [0], [1], [0, 0, 1, 1], [], []>} : vector<32x32xf32>, vector<32x128xf32>, vector<32x128xf32> -> vector<32x128xf32>
    %6 = arith.addf %2, %5 : vector<32x128xf32>
    %c0_8 = arith.constant 0 : index
    %c0_9 = arith.constant 0 : index
    %7 = vector.load %arg5[%c0_8, %c0_9] : memref<1x128xf32, #tpu.memory_space<vmem>>, vector<1x128xf32>
    %8 = vector.broadcast %7 : vector<1x128xf32> to vector<32x128xf32>
    %9 = arith.addf %6, %8 : vector<32x128xf32>
    %c0_10 = arith.constant 0 : index
    %c0_11 = arith.constant 0 : index
    %10 = vector.load %arg6[%c0_10, %c0_11] : memref<32x128xf32, #tpu.memory_space<vmem>>, vector<32x128xf32>
    tpu.vector_store %arg6[%c0_10, %c0_11], %9 {strides = array<i32>} : memref<32x128xf32, #tpu.memory_space<vmem>>, vector<32x128xf32>,
    return
  }
  func.func @transform_0(%arg0: i32) -> (i32, i32) {
    %c0_i32 = arith.constant 0 : i32
    %c0_i32_0 = arith.constant 0 : i32
    return %arg0, %c0_i32 : i32, i32
  }
  func.func @transform_1(%arg0: i32) -> (i32, i32) {
    %c0_i32 = arith.constant 0 : i32
    %c0_i32_0 = arith.constant 0 : i32
    return %arg0, %c0_i32 : i32, i32
  }
  func.func @transform_2(%arg0: i32) -> (i32, i32) {
    %c0_i32 = arith.constant 0 : i32
    %c0_i32_0 = arith.constant 0 : i32
    %c0_i32_1 = arith.constant 0 : i32
    return %c0_i32, %c0_i32_0 : i32, i32
  }
  func.func @transform_3(%arg0: i32) -> (i32, i32) {
    %c0_i32 = arith.constant 0 : i32
    %c0_i32_0 = arith.constant 0 : i32
    %c0_i32_1 = arith.constant 0 : i32
    return %c0_i32, %c0_i32_0 : i32, i32
  }
  func.func @transform_4(%arg0: i32) -> (i32, i32) {
    %c0_i32 = arith.constant 0 : i32
    %c0_i32_0 = arith.constant 0 : i32
    %c0_i32_1 = arith.constant 0 : i32
    return %c0_i32, %c0_i32_0 : i32, i32
  }
  func.func @transform_5(%arg0: i32) -> (i32, i32) {
    %c0_i32 = arith.constant 0 : i32
    %c0_i32_0 = arith.constant 0 : i32
    return %arg0, %c0_i32 : i32, i32
  }
}

</mosaic_0001>

<bundles_post_ra>
// kernel: tpu_custom_call.1
= control target key start
LH: loop header
LB: loop body
LE: loop exit
PB: predicated region body
PF: predicated region fallthrough
CT: control target
= control target key end

     0   :  { %10 = vsyncpa [#allocation3], 0  ;;  %s447_s0 = inlined_call_operand.hbm [shape: f32[32,48], index: 0, kind: input, shape index: {}]   ;;  %s448_s1 = inlined_call_operand.hbm [shape: f32[32,32], index: 1, kind: input, shape index: {}]   ;;  %s449_s2 = inlined_call_operand.hbm [shape: f32[48,128], index: 2, kind: input, shape index: {}]   ;;  %s450_s3 = inlined_call_operand.hbm [shape: f32[32,128], index: 3, kind: input, shape index: {}]   ;;  %s451_s4 = inlined_call_operand.vmem [shape: f32[1,128], index: 4, kind: input, shape index: {}]   ;;  %s452_s5 = inlined_call_operand.hbm [shape: f32[32,128], index: 5, kind: output, shape index: {}]  }
   0x1   :  { %11 = vsyncpa [#allocation6], 0 }
   0x2   :  { %12 = vsyncpa [#allocation9], 0 }
   0x3   :  { %13 = vsyncpa [#allocation4], 0  ;;  %s31_s20 = sshll.u32 %s448_s1, 4  ;;  %s373_s21 = smov [#allocation5]   ;;  %s32_s20 = int_to_ptr.hbm [resolvable:$true] %s31_s20 }
   0x4   :  { %s33_s22 = sshll.u32 %s373_s21, 4  ;;  %s18_s25 = sshll.u32 %s447_s0, 4  ;;  %s34_s22 = int_to_ptr.vmem [resolvable:$true] %s33_s22  ;;  %s19_s25 = int_to_ptr.hbm [resolvable:$true] %s18_s25 }
   0x5   :  { %s374_s26 = smov 128   ;;  %s375_s27 = smov 8  }
   0x6   :  { %39 = dma.hbm_to_vmem [thread:$0]  %s32_s20, 512, %s34_s22, [#allocation6], %s374_s26, %s374_s26, %s375_s27  }
   0x7   :  { %s376_s28 = smov [#allocation2]   ;;  %s44_s1 = sshll.u32 %s449_s2, 4  ;;  %s45_s1 = int_to_ptr.hbm [resolvable:$true] %s44_s1 }
   0x8   :  { %s20_s29 = sshll.u32 %s376_s28, 4  ;;  %s57_s8 = sshll.u32 %s450_s3, 4  ;;  %s21_s29 = int_to_ptr.vmem [resolvable:$true] %s20_s29  ;;  %s58_s8 = int_to_ptr.hbm [resolvable:$true] %s57_s8 }
   0x9   :  { %26 = dma.hbm_to_vmem [thread:$0]  %s19_s25, 512, %s21_s29, [#allocation3], %s374_s26, %s374_s26, %s375_s27  }
   0xa   :  { %s377_s9 = smov [#allocation7]   ;;  %s378_s11 = smov [#allocation8]  }
   0xb   :  { %s46_s10 = sshll.u32 %s377_s9, 4  ;;  %s59_s2 = sshll.u32 %s378_s11, 4  ;;  %s47_s10 = int_to_ptr.vmem [resolvable:$true] %s46_s10  ;;  %s60_s2 = int_to_ptr.vmem [resolvable:$true] %s59_s2 }
   0xc   :  { %52 = dma.hbm_to_vmem [thread:$0]  %s45_s1, 768, %s47_s10, [#allocation6], %s374_s26, %s374_s26, %s375_s27  }
   0xd   :  { %65 = dma.hbm_to_vmem [thread:$0]  %s58_s8, 512, %s60_s2, [#allocation9], %s374_s26, %s374_s26, %s375_s27  }
   0xe   :  { %365 = dma.done.wait [#allocation3], 512  }
   0xf   :  { %366 = vsyncadd [#allocation3], 4294966784 }
  0x10   :  { %367 = dma.done.wait [#allocation6], 1280  }
  0x11   :  { %368 = vsyncadd [#allocation6], 4294966016 }
  0x12   :  { %369 = dma.done.wait [#allocation9], 512  }
  0x13   :  { %370 = vsyncadd [#allocation9], 4294966784  ;;  %v101_v0 = vld [vmem:[#allocation8 + $0x18] sm:$0xff]  ;;  %v100_v2 = vld [vmem:[#allocation8 + $0x10] sm:$0xff]  ;;  %vm102_vm0 = vcmask 261120   ;;  %vm144_vm1 = vcmask 392192  }
  0x14   :  { %v93_v1 = vld [vmem:[#allocation7 + $0x28] sm:$0xff]  ;;  %227 = vmatpush.msra.mxu3 %v101_v0  ;;  %v92_v3 = vld [vmem:[#allocation7 + $0x20] sm:$0xff]  ;;  %v99_v4 = vld [vmem:[#allocation8 + $0x8] sm:$0xff]  ;;  %127 = vmatpush.msra.mxu0 %v101_v0  ;;  %s379_s13 = smov [#allocation10]  }
  0x15   :  { %167 = vmatpush.msra.mxu1 %v93_v1  ;;  %231 = vmatpush.msra.mxu2 %v93_v1  ;;  %v91_v5 = vld [vmem:[#allocation7 + $0x18] sm:$0xff]  ;;  %v98_v6 = vld [vmem:[#allocation8] sm:$0xff]  ;;  %v95_v8 = vld [vmem:[#allocation5 + $0x8] sm:$0xff]  ;;  %s202_s14 = sshll.u32 %s379_s13, 4  ;;  %s203_s14 = int_to_ptr.vmem [resolvable:$true] %s202_s14 }
  0x16   :  { %228 = vmatpush.msra.mxu3 %v100_v2  ;;  %v90_v7 = vld [vmem:[#allocation7 + $0x10] sm:$0xff]  ;;  %128 = vmatpush.msra.mxu0 %v100_v2  ;;  %v89_v9 = vld [vmem:[#allocation7 + $0x8] sm:$0xff]  ;;  %v94_v10 = vld [vmem:[#allocation5] sm:$0xff] }
  0x17   :  { %168 = vmatpush.msra.mxu1 %v92_v3  ;;  %232 = vmatpush.msra.mxu2 %v92_v3  ;;  %v88_v11 = vld [vmem:[#allocation7] sm:$0xff]  ;;  %v86_v13 = vld [vmem:[#allocation2 + $0x10] sm:$0xff]  ;;  %v85_v15 = vld [vmem:[#allocation2 + $0x8] sm:$0xff] }
  0x18   :  { %229 = vmatpush.msra.mxu3 %v99_v4  ;;  %129 = vmatpush.msra.mxu0 %v99_v4  ;;  %v84_v12 = vld [vmem:[#allocation2] sm:$0xff]  ;;  %v96_v14 = vld [vmem:[#allocation5 + $0x10] sm:$0xff]  ;;  %v87_v16 = vld [vmem:[#allocation2 + $0x18] sm:$0xff] }
  0x19   :  { %169 = vmatpush.msra.mxu1 %v91_v5  ;;  %233 = vmatpush.msra.mxu2 %v91_v5  ;;  %v97_v17 = vld [vmem:[#allocation5 + $0x18] sm:$0xff]  ;;  %v244_v20 = vld [vmem:[%s451_s4] ss:$0 sm:$0xff]  ;;  %s204_s4 = sshll.u32 %s452_s5, 4  ;;  %s205_s4 = int_to_ptr.hbm [resolvable:$true] %s204_s4 }
  0x1a   :  { %230 = vmatpush.msra.mxu3 %v98_v6  ;;  %130 = vmatpush.msra.mxu0 %v98_v6 }
  0x1b   :  { %170 = vmatpush.msra.mxu1 %v90_v7  ;;  %220 = vmatmul.msk.f32.vlgmr.msra.gmra.mxu3 %vm102_vm0, %v95_v8 }
  0x1c   :  { %234 = vmatpush.msra.mxu2 %v90_v7  ;;  %219 = vmatmul.msk.f32.vlgmr.msra.gmra.mxu0 %vm102_vm0, %v94_v10 }
  0x1d   :  { %171 = vmatpush.msra.mxu1 %v89_v9 }
  0x1e   :  { %235 = vmatpush.msra.mxu2 %v89_v9 }
  0x1f   :  { %172 = vmatpush.msra.mxu1 %v88_v11 }
  0x20   :  { %223 = vmatmul.msk.f32.vlgmr.msra.gmra.mxu1 %vm144_vm1, %v84_v12  ;;  %236 = vmatpush.msra.mxu2 %v88_v11 }
  0x21   :  { %225 = vmatmul.msk.f32.vlgmr.msra.gmra.mxu2 %vm144_vm1, %v86_v13 }
  0x23   :  { %221 = vmatmul.msk.f32.gmra.mxu3 %vm102_vm0, %v96_v14 }
  0x28   :  { %224 = vmatmul.msk.f32.gmra.mxu1 %vm144_vm1, %v85_v15 }
  0x29   :  { %226 = vmatmul.msk.f32.gmra.mxu2 %vm144_vm1, %v87_v16 }
  0x2b   :  { %222 = vmatmul.msk.f32.gmra.mxu3 %vm102_vm0, %v97_v17 }
  0x99   :  { %v132_v18 = vpop.f32.mrf.mxu0 }
  0x9d   :  { %v174_v19 = vpop.f32.mrf.mxu1 }
  0x9e   :  { %v175_v21 = vadd.f32 %v174_v19, %v132_v18  ;;  %v135_v22 = vpop.f32.mrf.mxu3 }
  0xa0   :  { %v190_v23 = vadd.f32 %v244_v20, %v175_v21 }
  0xa2   :  { %194 = vst [vmem:[#allocation10] sm:$0xff] %v190_v23 }
  0xa4   :  { %v180_v24 = vpop.f32.mrf.mxu2 }
  0xa5   :  { %v177_v25 = vpop.f32.mrf.mxu1 }
  0xa6   :  { %v178_v26 = vadd.f32 %v177_v25, %v135_v22  ;;  %v138_v27 = vpop.f32.mrf.mxu3 }
  0xa7   :  { %v181_v29 = vadd.f32 %v180_v24, %v138_v27 }
  0xa8   :  { %v191_v28 = vadd.f32 %v244_v20, %v178_v26 }
  0xa9   :  { %v192_v30 = vadd.f32 %v244_v20, %v181_v29 }
  0xaa   :  { %195 = vst [vmem:[#allocation10 + $0x8] sm:$0xff] %v191_v28 }
  0xab   :  { %196 = vst [vmem:[#allocation10 + $0x10] sm:$0xff] %v192_v30 }
  0xac   :  { %v183_v31 = vpop.f32.mrf.mxu2 }
  0xae   :  { %v141_v32 = vpop.f32.mrf.mxu3 }
  0xaf   :  { %v184_v33 = vadd.f32 %v183_v31, %v141_v32 }
  0xb1   :  { %v193_v34 = vadd.f32 %v244_v20, %v184_v33 }
  0xb3   :  { %197 = vst [vmem:[#allocation10 + $0x18] sm:$0xff] %v193_v34 }
  0xb4   :  { %210 = dma.vmem_to_hbm [thread:$0]  %s203_s14, 512, %s205_s4, [#allocation4], %s374_s26, %s374_s26, %s375_s27  }
  0xb5   :  { %371 = dma.done.wait [#allocation4], 512  }
  0xb6   :  { %372 = vsyncadd [#allocation4], 4294966784 }
  0xb7   :  { %215 = vsyncpa [#allocation3], 1 }
  0xb8   :  { %216 = vsyncpa [#allocation6], 1 }
  0xb9   :  { %217 = vsyncpa [#allocation9], 1 }
  0xba   :  { %218 = vsyncpa [#allocation4], 1 }

</bundles_post_ra>
